<compile_context>
chip_gen: v6e
topology: v6e:2x2x1
jax: 0.10.0
libtpu: 0.0.40
codegen_flags: <defaults>
</compile_context>

<pallas_src>
import inspect
import math

import jax
import jax.numpy as jnp
from jax.experimental import pallas as pl
from jax.experimental.pallas import tpu as pltpu


def _round_up(x, m):
    return (x + m - 1) // m * m


# Constant-index (weight/bias) blocks are fetched once per kernel launch; single-buffer
# them when the installed Pallas exposes pipeline_mode so they don't pay for a second
# VMEM copy (matters once E/H reach realistic sizes).
try:
    _RESIDENT_KWARGS = (
        {"pipeline_mode": pl.Buffered(1)}
        if "pipeline_mode" in inspect.signature(pl.BlockSpec).parameters
        else {}
    )
except Exception:  # pragma: no cover - defensive
    _RESIDENT_KWARGS = {}


def _decoder_kernel(z_ref, w1_ref, b1_ref, w2_ref, b2_ref, o_ref):
    # fc1 on the MXU: bf16 operands, f32 accumulation.
    zb = z_ref[...].astype(jnp.bfloat16)
    h = jnp.dot(zb, w1_ref[...], preferred_element_type=jnp.float32)
    h = h + b1_ref[...]                      # [1, H_pad] broadcasts over rows (f32)
    # LeakyReLU(0.1): slope in (0,1) => max(x, 0.1x) == leaky_relu(x). Single VALU max.
    h = jnp.maximum(h, 0.1 * h)
    # TODO(synk): dropout is identity in eval mode; training-mode RNG mask not emitted here.
    # TODO(synk): if H_pad grows large (>~2048), chunk the hidden dim here (fori_loop,
    # unroll=True) accumulating fc2 partials instead of holding the full [tm, H_pad] h.
    # fc2 on the MXU: bf16 operands, f32 accumulation; output block is [tm, F].
    out = jnp.dot(h.astype(jnp.bfloat16), w2_ref[...], preferred_element_type=jnp.float32)
    out = out + b2_ref[...]                  # [1, F] (f32)
    o_ref[...] = out.astype(o_ref.dtype)


def prepare_decoder_params(w1, b1, w2, b2):
    """One-time parameter preparation (hoisted out of the per-call hot path).

    w1: [E, H], b1: [H], w2: [H, F], b2: [F].
    Hidden dim H is zero-padded to a multiple of 128 so fc1's output and fc2's contraction
    are lane-aligned; padded hidden columns are exactly zero and therefore inert through
    LeakyReLU and fc2. Weights are cast to bf16 once (f32 accumulation in the kernel).
    """
    E, H = w1.shape
    F = w2.shape[1]
    H_pad = _round_up(H, 128)
    w1p = jnp.zeros((E, H_pad), jnp.bfloat16).at[:, :H].set(w1.astype(jnp.bfloat16))
    b1p = jnp.zeros((1, H_pad), jnp.float32).at[:, :H].set(
        b1.reshape(1, H).astype(jnp.float32))
    w2p = jnp.zeros((H_pad, F), jnp.bfloat16).at[:H, :].set(w2.astype(jnp.bfloat16))
    b2p = b2.reshape(1, F).astype(jnp.float32)
    return w1p, b1p, w2p, b2p


def feature_decoder(z, params, *, tm_max=512, out_dtype=None):
    """Fused FeatureDecoder forward.

    z: [..., E] (f32 or bf16 -- pass bf16 from the producer to halve the HBM read).
    params: output of prepare_decoder_params.
    Returns [..., F] in `out_dtype` (defaults to z.dtype).
    NOTE: for best MXU utilisation E should be a multiple of 128 (256 on v6e/v7x);
    fold that padding into the producer of z, not an extra wrapper copy.
    """
    w1p, b1p, w2p, b2p = params
    E, H_pad = w1p.shape
    F = w2p.shape[1]
    if z.shape[-1] != E:
        raise ValueError(f"z last dim {z.shape[-1]} does not match weights ({E})")
    out_dtype = z.dtype if out_dtype is None else out_dtype

    z2d = z.reshape(-1, E)
    N = z2d.shape[0]

    # ---- Row-tile policy -------------------------------------------------------------
    # Split N evenly over the grid (waste confined to the ragged last tile, which Pallas
    # masks on writeback -- no HBM pad/slice copies). Force >= 2 (even) steps so the
    # "parallel" grid axis can shard across v7x's two TensorCores for mid-size N.
    steps = pl.cdiv(N, tm_max)
    if N >= 16 and steps < 2:
        steps = 2
    if steps > 1 and steps % 2:
        steps += 1
    tm = min(_round_up(pl.cdiv(N, steps), 8), _round_up(tm_max, 8))

    z_item = jnp.dtype(z2d.dtype).itemsize
    o_item = jnp.dtype(out_dtype).itemsize
    w_bytes = (w1p.size + w2p.size) * 2 + (b1p.size + b2p.size) * 4
    w_bufs = 1 if _RESIDENT_KWARGS else 2

    def vmem_bytes(t):
        # double-buffered z tile + double-buffered out tile + resident weights
        # + [t, H_pad] f32 intermediate and its bf16 copy.
        return 2 * t * E * z_item + 2 * t * F * o_item + w_bufs * w_bytes + t * H_pad * 6

    # Keep per-step footprint under v5e's 16 MiB scoped-VMEM default when possible.
    budget = 14 * 1024 * 1024
    while tm > 8 and vmem_bytes(tm) > budget:
        tm = max(_round_up(tm // 2, 8), 8)
    compiler_kwargs = {}
    if vmem_bytes(tm) > budget:
        # Weights alone exceed the default scoped limit; raise it explicitly but stay
        # comfortably below v7x's 64 MiB physical VMEM.
        compiler_kwargs["vmem_limit_bytes"] = min(int(vmem_bytes(tm) * 1.25),
                                                  60 * 1024 * 1024)

    grid = (pl.cdiv(N, tm),)

    flops = 2 * N * (E * H_pad + H_pad * F)
    bytes_accessed = N * E * z_item + N * F * o_item + w_bytes

    def run(resident_kwargs):
        def rspec(shape):
            nd = len(shape)
            return pl.BlockSpec(shape, lambda *_: (0,) * nd, **resident_kwargs)

        return pl.pallas_call(
            _decoder_kernel,
            out_shape=jax.ShapeDtypeStruct((N, F), out_dtype),
            grid_spec=pltpu.PrefetchScalarGridSpec(
                num_scalar_prefetch=0,
                grid=grid,
                in_specs=[
                    pl.BlockSpec((tm, E), lambda i: (i, 0)),  # streamed z row tile
                    rspec((E, H_pad)),                        # W1 (resident)
                    rspec((1, H_pad)),                        # b1 (resident)
                    rspec((H_pad, F)),                        # W2 (resident)
                    rspec((1, F)),                            # b2 (resident)
                ],
                out_specs=pl.BlockSpec((tm, F), lambda i: (i, 0)),
            ),
            compiler_params=pltpu.CompilerParams(
                dimension_semantics=("parallel",), **compiler_kwargs
            ),
            cost_estimate=pl.CostEstimate(
                flops=flops, transcendentals=0, bytes_accessed=bytes_accessed
            ),
        )(z2d, w1p, b1p, w2p, b2p)

    try:
        out = run(_RESIDENT_KWARGS)
    except Exception:
        if not _RESIDENT_KWARGS:
            raise
        # Fall back to default double-buffered constant blocks if Buffered(1) is rejected.
        out = run({})

    return out.reshape(*z.shape[:-1], F)


def xavier_uniform(key, fan_in, fan_out, dtype=jnp.float32):
    # Matches torch.nn.init.xavier_uniform_ (gain=1): U(-a, a), a = sqrt(6/(fan_in+fan_out))
    a = math.sqrt(6.0 / (fan_in + fan_out))
    return jax.random.uniform(key, (fan_in, fan_out), dtype=dtype, minval=-a, maxval=a)


if __name__ == "__main__":
    # Module hyperparameters (small synthetic sizes consistent with the PyTorch module).
    embed_dim = 32
    num_features = 4
    hidden = embed_dim // 2
    batch, seq = 2, 8

    key = jax.random.PRNGKey(0)
    k_z, k_w1, k_w2 = jax.random.split(key, 3)

    # Deterministic parameter init (xavier_uniform weights, zero biases), stored as
    # [in, out] (transpose of torch's nn.Linear weight layout).
    w1 = xavier_uniform(k_w1, embed_dim, hidden)
    b1 = jnp.zeros((hidden,), dtype=jnp.float32)
    w2 = xavier_uniform(k_w2, hidden, num_features)
    b2 = jnp.zeros((num_features,), dtype=jnp.float32)

    # One-time parameter prep (padding + bf16 cast) -- done once, not per forward call.
    params = prepare_decoder_params(w1, b1, w2, b2)

    # z in f32 to match the PyTorch module; a bf16 producer would halve the HBM read.
    z = jax.random.normal(k_z, (batch, seq, embed_dim), dtype=jnp.float32)

    out = feature_decoder(z, params)
    out = jax.block_until_ready(out)
    assert out.shape == (batch, seq, num_features)
    assert out.dtype == z.dtype

    # Reference in plain JAX with the same bf16-operand / f32-accumulate quantization the
    # kernel uses (eval-mode dropout == identity).
    def bf(x):
        return x.astype(jnp.bfloat16).astype(jnp.float32)

    h_ref = bf(z.reshape(-1, embed_dim)) @ bf(w1) + b1
    h_ref = jnp.where(h_ref > 0, h_ref, 0.1 * h_ref)
    ref = (bf(h_ref) @ bf(w2) + b2).reshape(batch, seq, num_features)
    assert jnp.allclose(out, ref, atol=1e-4, rtol=1e-4)

    # Loose sanity check against the pure-f32 math as well.
    h32 = z.reshape(-1, embed_dim) @ w1 + b1
    h32 = jnp.where(h32 > 0, h32, 0.1 * h32)
    ref32 = (h32 @ w2 + b2).reshape(batch, seq, num_features)
    assert jnp.allclose(out, ref32, atol=2e-2, rtol=2e-2)

    print("KERNEL_OK")
</pallas_src>

<mosaic_0001>
module attributes {stable_mosaic.version = 11 : i64} {
  func.func @_decoder_kernel(%arg0: i32, %arg1: memref<8x32xf32, #tpu.memory_space<vmem>>, %arg2: memref<32x128xbf16, #tpu.memory_space<vmem>>, %arg3: memref<1x128xf32, #tpu.memory_space<vmem>>, %arg4: memref<128x4xbf16, #tpu.memory_space<vmem>>, %arg5: memref<1x4xf32, #tpu.memory_space<vmem>>, %arg6: memref<8x4xf32, #tpu.memory_space<vmem>>) attributes {dimension_semantics = [#tpu.dimension_semantics<parallel>], iteration_bounds = array<i64: 2>, scalar_prefetch = 0 : i64, scratch_operands = 0 : i64, tpu.core_type = #tpu.core_type<tc>, window_params = [{transform_indices = @transform_0, window_bounds = array<i64: 8, 32>}, {pipeline_mode = #tpu.pipeline_mode<synchronous>, transform_indices = @transform_1, window_bounds = array<i64: 32, 128>}, {pipeline_mode = #tpu.pipeline_mode<synchronous>, transform_indices = @transform_2, window_bounds = array<i64: 1, 128>}, {pipeline_mode = #tpu.pipeline_mode<synchronous>, transform_indices = @transform_3, window_bounds = array<i64: 128, 4>}, {pipeline_mode = #tpu.pipeline_mode<synchronous>, transform_indices = @transform_4, window_bounds = array<i64: 1, 4>}, {transform_indices = @transform_5, window_bounds = array<i64: 8, 4>}]} {
    %c0 = arith.constant 0 : index
    %c0_0 = arith.constant 0 : index
    %0 = vector.load %arg1[%c0, %c0_0] : memref<8x32xf32, #tpu.memory_space<vmem>>, vector<8x32xf32>
    %1 = arith.truncf %0 : vector<8x32xf32> to vector<8x32xbf16>
    %c0_1 = arith.constant 0 : index
    %c0_2 = arith.constant 0 : index
    %2 = vector.load %arg2[%c0_1, %c0_2] : memref<32x128xbf16, #tpu.memory_space<vmem>>, vector<32x128xbf16>
    %cst = arith.constant dense<0.000000e+00> : vector<8x128xf32>
    %3 = tpu.matmul %1, %2, %cst {dimension_numbers = #tpu.dot_dimension_numbers<[1], [0], [0], [1], [0, 0, 1, 1], [], []>} : vector<8x32xbf16>, vector<32x128xbf16>, vector<8x128xf32> -> vector<8x128xf32>
    %c0_3 = arith.constant 0 : index
    %c0_4 = arith.constant 0 : index
    %4 = vector.load %arg3[%c0_3, %c0_4] : memref<1x128xf32, #tpu.memory_space<vmem>>, vector<1x128xf32>
    %5 = vector.broadcast %4 : vector<1x128xf32> to vector<8x128xf32>
    %6 = arith.addf %3, %5 : vector<8x128xf32>
    %cst_5 = arith.constant 1.000000e-01 : f32
    %7 = vector.broadcast %cst_5 : f32 to vector<8x128xf32>
    %8 = arith.mulf %7, %6 : vector<8x128xf32>
    %9 = arith.maximumf %6, %8 : vector<8x128xf32>
    %10 = arith.truncf %9 : vector<8x128xf32> to vector<8x128xbf16>
    %c0_6 = arith.constant 0 : index
    %c0_7 = arith.constant 0 : index
    %11 = vector.load %arg4[%c0_6, %c0_7] : memref<128x4xbf16, #tpu.memory_space<vmem>>, vector<128x4xbf16>
    %cst_8 = arith.constant dense<0.000000e+00> : vector<8x4xf32>
    %12 = tpu.matmul %10, %11, %cst_8 {dimension_numbers = #tpu.dot_dimension_numbers<[1], [0], [0], [1], [0, 0, 1, 1], [], []>} : vector<8x128xbf16>, vector<128x4xbf16>, vector<8x4xf32> -> vector<8x4xf32>
    %c0_9 = arith.constant 0 : index
    %c0_10 = arith.constant 0 : index
    %13 = vector.load %arg5[%c0_9, %c0_10] : memref<1x4xf32, #tpu.memory_space<vmem>>, vector<1x4xf32>
    %14 = vector.broadcast %13 : vector<1x4xf32> to vector<8x4xf32>
    %15 = arith.addf %12, %14 : vector<8x4xf32>
    %c0_11 = arith.constant 0 : index
    %c0_12 = arith.constant 0 : index
    %16 = vector.load %arg6[%c0_11, %c0_12] : memref<8x4xf32, #tpu.memory_space<vmem>>, vector<8x4xf32>
    tpu.vector_store %arg6[%c0_11, %c0_12], %15 {strides = array<i32>} : memref<8x4xf32, #tpu.memory_space<vmem>>, vector<8x4xf32>,
    return
  }
  func.func @transform_0(%arg0: i32) -> (i32, i32) {
    %c0_i32 = arith.constant 0 : i32
    %c0_i32_0 = arith.constant 0 : i32
    return %arg0, %c0_i32 : i32, i32
  }
  func.func @transform_1(%arg0: i32) -> (i32, i32) {
    %c0_i32 = arith.constant 0 : i32
    %c0_i32_0 = arith.constant 0 : i32
    %c0_i32_1 = arith.constant 0 : i32
    return %c0_i32, %c0_i32_0 : i32, i32
  }
  func.func @transform_2(%arg0: i32) -> (i32, i32) {
    %c0_i32 = arith.constant 0 : i32
    %c0_i32_0 = arith.constant 0 : i32
    %c0_i32_1 = arith.constant 0 : i32
    return %c0_i32, %c0_i32_0 : i32, i32
  }
  func.func @transform_3(%arg0: i32) -> (i32, i32) {
    %c0_i32 = arith.constant 0 : i32
    %c0_i32_0 = arith.constant 0 : i32
    %c0_i32_1 = arith.constant 0 : i32
    return %c0_i32, %c0_i32_0 : i32, i32
  }
  func.func @transform_4(%arg0: i32) -> (i32, i32) {
    %c0_i32 = arith.constant 0 : i32
    %c0_i32_0 = arith.constant 0 : i32
    %c0_i32_1 = arith.constant 0 : i32
    return %c0_i32, %c0_i32_0 : i32, i32
  }
  func.func @transform_5(%arg0: i32) -> (i32, i32) {
    %c0_i32 = arith.constant 0 : i32
    %c0_i32_0 = arith.constant 0 : i32
    return %arg0, %c0_i32 : i32, i32
  }
}

module attributes {stable_mosaic.version = 11 : i64} {
  func.func @_decoder_kernel(%arg0: i32, %arg1: memref<8x32xf32, #tpu.memory_space<vmem>>, %arg2: memref<32x128xbf16, #tpu.memory_space<vmem>>, %arg3: memref<1x128xf32, #tpu.memory_space<vmem>>, %arg4: memref<128x4xbf16, #tpu.memory_space<vmem>>, %arg5: memref<1x4xf32, #tpu.memory_space<vmem>>, %arg6: memref<8x4xf32, #tpu.memory_space<vmem>>) attributes {dimension_semantics = [#tpu.dimension_semantics<parallel>], iteration_bounds = array<i64: 2>, scalar_prefetch = 0 : i64, scratch_operands = 0 : i64, tpu.core_type = #tpu.core_type<tc>, window_params = [{transform_indices = @transform_0, window_bounds = array<i64: 8, 32>}, {pipeline_mode = #tpu.pipeline_mode<synchronous>, transform_indices = @transform_1, window_bounds = array<i64: 32, 128>}, {pipeline_mode = #tpu.pipeline_mode<synchronous>, transform_indices = @transform_2, window_bounds = array<i64: 1, 128>}, {pipeline_mode = #tpu.pipeline_mode<synchronous>, transform_indices = @transform_3, window_bounds = array<i64: 128, 4>}, {pipeline_mode = #tpu.pipeline_mode<synchronous>, transform_indices = @transform_4, window_bounds = array<i64: 1, 4>}, {transform_indices = @transform_5, window_bounds = array<i64: 8, 4>}]} {
    %c0 = arith.constant 0 : index
    %c0_0 = arith.constant 0 : index
    %0 = vector.load %arg1[%c0, %c0_0] : memref<8x32xf32, #tpu.memory_space<vmem>>, vector<8x32xf32>
    %1 = arith.truncf %0 : vector<8x32xf32> to vector<8x32xbf16>
    %c0_1 = arith.constant 0 : index
    %c0_2 = arith.constant 0 : index
    %2 = vector.load %arg2[%c0_1, %c0_2] : memref<32x128xbf16, #tpu.memory_space<vmem>>, vector<32x128xbf16>
    %cst = arith.constant dense<0.000000e+00> : vector<8x128xf32>
    %3 = tpu.matmul %1, %2, %cst {dimension_numbers = #tpu.dot_dimension_numbers<[1], [0], [0], [1], [0, 0, 1, 1], [], []>} : vector<8x32xbf16>, vector<32x128xbf16>, vector<8x128xf32> -> vector<8x128xf32>
    %c0_3 = arith.constant 0 : index
    %c0_4 = arith.constant 0 : index
    %4 = vector.load %arg3[%c0_3, %c0_4] : memref<1x128xf32, #tpu.memory_space<vmem>>, vector<1x128xf32>
    %5 = vector.broadcast %4 : vector<1x128xf32> to vector<8x128xf32>
    %6 = arith.addf %3, %5 : vector<8x128xf32>
    %cst_5 = arith.constant 1.000000e-01 : f32
    %7 = vector.broadcast %cst_5 : f32 to vector<8x128xf32>
    %8 = arith.mulf %7, %6 : vector<8x128xf32>
    %9 = arith.maximumf %6, %8 : vector<8x128xf32>
    %10 = arith.truncf %9 : vector<8x128xf32> to vector<8x128xbf16>
    %c0_6 = arith.constant 0 : index
    %c0_7 = arith.constant 0 : index
    %11 = vector.load %arg4[%c0_6, %c0_7] : memref<128x4xbf16, #tpu.memory_space<vmem>>, vector<128x4xbf16>
    %cst_8 = arith.constant dense<0.000000e+00> : vector<8x4xf32>
    %12 = tpu.matmul %10, %11, %cst_8 {dimension_numbers = #tpu.dot_dimension_numbers<[1], [0], [0], [1], [0, 0, 1, 1], [], []>} : vector<8x128xbf16>, vector<128x4xbf16>, vector<8x4xf32> -> vector<8x4xf32>
    %c0_9 = arith.constant 0 : index
    %c0_10 = arith.constant 0 : index
    %13 = vector.load %arg5[%c0_9, %c0_10] : memref<1x4xf32, #tpu.memory_space<vmem>>, vector<1x4xf32>
    %14 = vector.broadcast %13 : vector<1x4xf32> to vector<8x4xf32>
    %15 = arith.addf %12, %14 : vector<8x4xf32>
    %c0_11 = arith.constant 0 : index
    %c0_12 = arith.constant 0 : index
    %16 = vector.load %arg6[%c0_11, %c0_12] : memref<8x4xf32, #tpu.memory_space<vmem>>, vector<8x4xf32>
    tpu.vector_store %arg6[%c0_11, %c0_12], %15 {strides = array<i32>} : memref<8x4xf32, #tpu.memory_space<vmem>>, vector<8x4xf32>,
    return
  }
  func.func @transform_0(%arg0: i32) -> (i32, i32) {
    %c0_i32 = arith.constant 0 : i32
    %c0_i32_0 = arith.constant 0 : i32
    return %arg0, %c0_i32 : i32, i32
  }
  func.func @transform_1(%arg0: i32) -> (i32, i32) {
    %c0_i32 = arith.constant 0 : i32
    %c0_i32_0 = arith.constant 0 : i32
    %c0_i32_1 = arith.constant 0 : i32
    return %c0_i32, %c0_i32_0 : i32, i32
  }
  func.func @transform_2(%arg0: i32) -> (i32, i32) {
    %c0_i32 = arith.constant 0 : i32
    %c0_i32_0 = arith.constant 0 : i32
    %c0_i32_1 = arith.constant 0 : i32
    return %c0_i32, %c0_i32_0 : i32, i32
  }
  func.func @transform_3(%arg0: i32) -> (i32, i32) {
    %c0_i32 = arith.constant 0 : i32
    %c0_i32_0 = arith.constant 0 : i32
    %c0_i32_1 = arith.constant 0 : i32
    return %c0_i32, %c0_i32_0 : i32, i32
  }
  func.func @transform_4(%arg0: i32) -> (i32, i32) {
    %c0_i32 = arith.constant 0 : i32
    %c0_i32_0 = arith.constant 0 : i32
    %c0_i32_1 = arith.constant 0 : i32
    return %c0_i32, %c0_i32_0 : i32, i32
  }
  func.func @transform_5(%arg0: i32) -> (i32, i32) {
    %c0_i32 = arith.constant 0 : i32
    %c0_i32_0 = arith.constant 0 : i32
    return %arg0, %c0_i32 : i32, i32
  }
}

</mosaic_0001>

<bundles_post_ra>
// kernel: tpu_custom_call.1
= control target key start
LH: loop header
LB: loop body
LE: loop exit
PB: predicated region body
PF: predicated region fallthrough
CT: control target
= control target key end

     0   :  { %s581_s18 = smov 0   ;;  %s641_s0 = inlined_call_operand.vmem [shape: f32[16,32], index: 0, kind: input, shape index: {}]   ;;  %s642_s1 = inlined_call_operand.vmem [shape: bf16[32,128], index: 1, kind: input, shape index: {}]   ;;  %s643_s2 = inlined_call_operand.vmem [shape: f32[1,128], index: 2, kind: input, shape index: {}]   ;;  %s644_s3 = inlined_call_operand.vmem [shape: bf16[128,4], index: 3, kind: input, shape index: {}]   ;;  %s645_s4 = inlined_call_operand.vmem [shape: f32[1,4], index: 4, kind: input, shape index: {}]   ;;  %s646_s5 = inlined_call_operand.vmem [shape: f32[16,4], index: 5, kind: output, shape index: {}]  }
   0x1 LB: > { %s459_s19 = sadd.s32 4294967295, %s547_s18   ;;  %p463_p0 = scmp.ge.s32.totalorder %s547_s18, 1  ;;  %s547_s18 = sphi %s581_s18, %s15_s18  }
   0x2   : > { %p186_p1 = scmp.lt.s32.totalorder %s547_s18, 3 }
   0x4   : > { %p187_p2 = pnand %p463_p0, %p186_p1 }
   0x5   : > { %p212_p3 = scmp.lt.s32.totalorder (!%p187_p2), %s459_s19, 1 }
   0x6   : > { %190 = sbr.rel (%p187_p2) target bundleno = 420 (0x1a4), region = 40 }
   0xb   : > { %v531_v0 = vld [vmem:[%s642_s1 + $0x8] sm:$0xff]   ;;  %v549_v1 = vmov 0.0   ;;  %v532_v2 = vld [vmem:[%s642_s1] sm:$0xff]   ;;  %vm550_vm0 = vmmov 0   ;;  %v533_v3 = vld [vmem:[%s644_s3 + $0x38] sm:$0xff]   ;;  %s648_s19 = smov (!%p212_p3, %s459_s19), 1 }
   0xc   : > { %493 = vmatprep.subr.bf16.mxu0 %v549_v1  ;;  %501 = vmatprep.subr.bf16.mxu1 %v549_v1  ;;  %v534_v4 = vld [vmem:[%s644_s3 + $0x30] sm:$0xff]   ;;  %s464_s28 = sshll.u32 %s648_s19, 3  ;;  %vm246_vm1 = vcmask 261120   ;;  %v535_v6 = vld [vmem:[%s644_s3 + $0x28] sm:$0xff]   ;;  %v536_v8 = vld [vmem:[%s644_s3 + $0x20] sm:$0xff]   ;;  %vm404_vm2 = vcmask 31744  }
   0xd   : > { %494 = vmatpush3.bf16.msra.mxu0 %v531_v0  ;;  %497 = vmatprep.mubr.msk.bf16.mxu0 %vm550_vm0, %v549_v1  ;;  %s215_s6 = scalar_lea.vmem %s641_s0, %s464_s28  ;;  %v537_v9 = vld [vmem:[%s644_s3 + $0x18] sm:$0xff]   ;;  %v538_v10 = vld [vmem:[%s644_s3 + $0x10] sm:$0xff]   ;;  %v539_v11 = vld [vmem:[%s644_s3 + $0x8] sm:$0xff]   ;;  %s219_s27 = scalar_lea.vmem %s646_s5, %s464_s28 }
   0xe   : > { %495 = vmatprep.subr.bf16.mxu0 %v549_v1  ;;  %517 = vmatprep.mubr.msk.bf16.mxu1 %vm550_vm0, %v549_v1  ;;  %v221_v5 = vld [vmem:[%s215_s6] sm:$0xff] }
   0xf   : > { %502 = vmatpush3.bf16.msra.mxu1 %v533_v3  ;;  %v222_v7 = vpack.c.bf16 %v221_v5, %v221_v5  ;;  %v540_v12 = vld [vmem:[%s644_s3] sm:$0xff]  }
  0x10   : > { %503 = vmatprep.subr.bf16.mxu1 %v549_v1  ;;  %v466_v13 = vld [vmem:[%s643_s2] ss:$0 sm:$0xff] }
  0x11   : > { %496 = vmatpush3.bf16.msra.mxu0 %v532_v2  ;;  %v470_v22 = vld [vmem:[%s645_s4] ss:$0 sm:$0xff] }
  0x13   : > { %504 = vmatpush3.bf16.msra.mxu1 %v534_v4 }
  0x14   : > { %505 = vmatprep.subr.bf16.mxu1 %v549_v1  ;;  %498 = vmatmul.mubr.msk.bf16.vlgmr.msra.gmra.mxu0 %vm246_vm1, %v222_v7 }
  0x17   : > { %506 = vmatpush3.bf16.msra.mxu1 %v535_v6 }
  0x18   : > { %507 = vmatprep.subr.bf16.mxu1 %v549_v1 }
  0x1b   : > { %508 = vmatpush3.bf16.msra.mxu1 %v536_v8 }
  0x1c   : > { %509 = vmatprep.subr.bf16.mxu1 %v549_v1 }
  0x1f   : > { %510 = vmatpush3.bf16.msra.mxu1 %v537_v9 }
  0x20   : > { %511 = vmatprep.subr.bf16.mxu1 %v549_v1 }
  0x23   : > { %512 = vmatpush3.bf16.msra.mxu1 %v538_v10 }
  0x24   : > { %513 = vmatprep.subr.bf16.mxu1 %v549_v1 }
  0x27   : > { %514 = vmatpush3.bf16.msra.mxu1 %v539_v11 }
  0x28   : > { %515 = vmatprep.subr.bf16.mxu1 %v549_v1 }
  0x2b   : > { %516 = vmatpush3.bf16.msra.mxu1 %v540_v12 }
  0xd4   : > { %v284_v14 = vpop.f32.mrf.mxu0 }
  0xd5   : > { %v285_v15 = vadd.f32 %v466_v13, %v284_v14 }
  0xd6   : > { %v499_v16 = vpop.f32.mrf.mxu0 }
  0xd7   : > { %v290_v17 = vmul.f32 0.1, %v285_v15 }
  0xd8   : > { %v287_v18 = vpop.f32.mrf.mxu0 }
  0xd9   : > { %v291_v19 = vmax.f32 %v285_v15, %v290_v17 }
  0xda   : > { %v500_v20 = vpop.f32.mrf.mxu0 }
  0xdb   : > { %v292_v21 = vpack.c.bf16 %v291_v19, %v291_v19 }
  0xdd   : > { %518 = vmatmul.mubr.bf16.vlgmr.msra.gmra.mxu1 %v292_v21 }
 0x19d   : > { %v398_v23 = vpop.f32.mrf.mxu1 }
 0x19e   : > { %v399_v24 = vadd.f32 %v470_v22, %v398_v23 }
 0x19f   : > { %v519_v25 = vpop.f32.mrf.mxu1 }
 0x1a0   : > { %405 = vst.msk [vmem:[%s219_s27] sm:$0xff] %vm404_vm2, %v399_v24 }
 0x1a1   : > { %v401_v26 = vpop.f32.mrf.mxu1 }
 0x1a3   : > { %v520_v27 = vpop.f32.mrf.mxu1 }
 0x1a4 PF: > { %s15_s18 = sadd.s32 1, %s547_s18  }
 0x1a5   : > { %p12_p4 = scmp.ge.s32.totalorder %s15_s18, 4  }
 0x1a7   :  { %14 = sbr.rel (!%p12_p4) target bundleno = 1 (0x1), region = 70 }

// kernel: tpu_custom_call.1
= control target key start
LH: loop header
LB: loop body
LE: loop exit
PB: predicated region body
PF: predicated region fallthrough
CT: control target
= control target key end

     0   :  { %s581_s18 = smov 0   ;;  %s641_s0 = inlined_call_operand.vmem [shape: f32[16,32], index: 0, kind: input, shape index: {}]   ;;  %s642_s1 = inlined_call_operand.vmem [shape: bf16[32,128], index: 1, kind: input, shape index: {}]   ;;  %s643_s2 = inlined_call_operand.vmem [shape: f32[1,128], index: 2, kind: input, shape index: {}]   ;;  %s644_s3 = inlined_call_operand.vmem [shape: bf16[128,4], index: 3, kind: input, shape index: {}]   ;;  %s645_s4 = inlined_call_operand.vmem [shape: f32[1,4], index: 4, kind: input, shape index: {}]   ;;  %s646_s5 = inlined_call_operand.vmem [shape: f32[16,4], index: 5, kind: output, shape index: {}]  }
   0x1 LB: > { %s459_s19 = sadd.s32 4294967295, %s547_s18   ;;  %p463_p0 = scmp.ge.s32.totalorder %s547_s18, 1  ;;  %s547_s18 = sphi %s581_s18, %s15_s18  }
   0x2   : > { %p186_p1 = scmp.lt.s32.totalorder %s547_s18, 3 }
   0x4   : > { %p187_p2 = pnand %p463_p0, %p186_p1 }
   0x5   : > { %p212_p3 = scmp.lt.s32.totalorder (!%p187_p2), %s459_s19, 1 }
   0x6   : > { %190 = sbr.rel (%p187_p2) target bundleno = 420 (0x1a4), region = 40 }
   0xb   : > { %v531_v0 = vld [vmem:[%s642_s1 + $0x8] sm:$0xff]   ;;  %v549_v1 = vmov 0.0   ;;  %v532_v2 = vld [vmem:[%s642_s1] sm:$0xff]   ;;  %vm550_vm0 = vmmov 0   ;;  %v533_v3 = vld [vmem:[%s644_s3 + $0x38] sm:$0xff]   ;;  %s648_s19 = smov (!%p212_p3, %s459_s19), 1 }
   0xc   : > { %493 = vmatprep.subr.bf16.mxu0 %v549_v1  ;;  %501 = vmatprep.subr.bf16.mxu1 %v549_v1  ;;  %v534_v4 = vld [vmem:[%s644_s3 + $0x30] sm:$0xff]   ;;  %s464_s28 = sshll.u32 %s648_s19, 3  ;;  %vm246_vm1 = vcmask 261120   ;;  %v535_v6 = vld [vmem:[%s644_s3 + $0x28] sm:$0xff]   ;;  %v536_v8 = vld [vmem:[%s644_s3 + $0x20] sm:$0xff]   ;;  %vm404_vm2 = vcmask 31744  }
   0xd   : > { %494 = vmatpush3.bf16.msra.mxu0 %v531_v0  ;;  %497 = vmatprep.mubr.msk.bf16.mxu0 %vm550_vm0, %v549_v1  ;;  %s215_s6 = scalar_lea.vmem %s641_s0, %s464_s28  ;;  %v537_v9 = vld [vmem:[%s644_s3 + $0x18] sm:$0xff]   ;;  %v538_v10 = vld [vmem:[%s644_s3 + $0x10] sm:$0xff]   ;;  %v539_v11 = vld [vmem:[%s644_s3 + $0x8] sm:$0xff]   ;;  %s219_s27 = scalar_lea.vmem %s646_s5, %s464_s28 }
   0xe   : > { %495 = vmatprep.subr.bf16.mxu0 %v549_v1  ;;  %517 = vmatprep.mubr.msk.bf16.mxu1 %vm550_vm0, %v549_v1  ;;  %v221_v5 = vld [vmem:[%s215_s6] sm:$0xff] }
   0xf   : > { %502 = vmatpush3.bf16.msra.mxu1 %v533_v3  ;;  %v222_v7 = vpack.c.bf16 %v221_v5, %v221_v5  ;;  %v540_v12 = vld [vmem:[%s644_s3] sm:$0xff]  }
  0x10   : > { %503 = vmatprep.subr.bf16.mxu1 %v549_v1  ;;  %v466_v13 = vld [vmem:[%s643_s2] ss:$0 sm:$0xff] }
  0x11   : > { %496 = vmatpush3.bf16.msra.mxu0 %v532_v2  ;;  %v470_v22 = vld [vmem:[%s645_s4] ss:$0 sm:$0xff] }
  0x13   : > { %504 = vmatpush3.bf16.msra.mxu1 %v534_v4 }
  0x14   : > { %505 = vmatprep.subr.bf16.mxu1 %v549_v1  ;;  %498 = vmatmul.mubr.msk.bf16.vlgmr.msra.gmra.mxu0 %vm246_vm1, %v222_v7 }
  0x17   : > { %506 = vmatpush3.bf16.msra.mxu1 %v535_v6 }
  0x18   : > { %507 = vmatprep.subr.bf16.mxu1 %v549_v1 }
  0x1b   : > { %508 = vmatpush3.bf16.msra.mxu1 %v536_v8 }
  0x1c   : > { %509 = vmatprep.subr.bf16.mxu1 %v549_v1 }
  0x1f   : > { %510 = vmatpush3.bf16.msra.mxu1 %v537_v9 }
  0x20   : > { %511 = vmatprep.subr.bf16.mxu1 %v549_v1 }
  0x23   : > { %512 = vmatpush3.bf16.msra.mxu1 %v538_v10 }
  0x24   : > { %513 = vmatprep.subr.bf16.mxu1 %v549_v1 }
  0x27   : > { %514 = vmatpush3.bf16.msra.mxu1 %v539_v11 }
  0x28   : > { %515 = vmatprep.subr.bf16.mxu1 %v549_v1 }
  0x2b   : > { %516 = vmatpush3.bf16.msra.mxu1 %v540_v12 }
  0xd4   : > { %v284_v14 = vpop.f32.mrf.mxu0 }
  0xd5   : > { %v285_v15 = vadd.f32 %v466_v13, %v284_v14 }
  0xd6   : > { %v499_v16 = vpop.f32.mrf.mxu0 }
  0xd7   : > { %v290_v17 = vmul.f32 0.1, %v285_v15 }
  0xd8   : > { %v287_v18 = vpop.f32.mrf.mxu0 }
  0xd9   : > { %v291_v19 = vmax.f32 %v285_v15, %v290_v17 }
  0xda   : > { %v500_v20 = vpop.f32.mrf.mxu0 }
  0xdb   : > { %v292_v21 = vpack.c.bf16 %v291_v19, %v291_v19 }
  0xdd   : > { %518 = vmatmul.mubr.bf16.vlgmr.msra.gmra.mxu1 %v292_v21 }
 0x19d   : > { %v398_v23 = vpop.f32.mrf.mxu1 }
 0x19e   : > { %v399_v24 = vadd.f32 %v470_v22, %v398_v23 }
 0x19f   : > { %v519_v25 = vpop.f32.mrf.mxu1 }
 0x1a0   : > { %405 = vst.msk [vmem:[%s219_s27] sm:$0xff] %vm404_vm2, %v399_v24 }
 0x1a1   : > { %v401_v26 = vpop.f32.mrf.mxu1 }
 0x1a3   : > { %v520_v27 = vpop.f32.mrf.mxu1 }
 0x1a4 PF: > { %s15_s18 = sadd.s32 1, %s547_s18  }
 0x1a5   : > { %p12_p4 = scmp.ge.s32.totalorder %s15_s18, 4  }
 0x1a7   :  { %14 = sbr.rel (!%p12_p4) target bundleno = 1 (0x1), region = 70 }

</bundles_post_ra>
